<compile_context>
chip_gen: v6e
topology: v6e:2x2x1
jax: 0.10.0
libtpu: 0.0.40
codegen_flags: <defaults>
</compile_context>

<pallas_src>
import numpy as np

import jax
import jax.numpy as jnp
from jax.experimental import pallas as pl
from jax.experimental.pallas import tpu as pltpu


# ----------------------------- Pallas kernel ------------------------------- #
def _ppm_bins_kernel(x_ref, mp_ref, w_ref, g_ref, bt_ref, mu_ref, ic_ref, o_ref):
    """One grid step = one pyramid bin, whole (small) batch.

    x_ref  : (N, C, S)   input, S = H*W on lanes (resident across bins)
    mp_ref : (S, Pmax)   adaptive-avg-pool operator^T (zero-padded cols past P)
    w_ref  : (R, C)      1x1 conv weight
    g_ref  : (R, 1)      BN gamma
    bt_ref : (R, 1)      BN beta
    mu_ref : (Pmax, S)   bilinear upsample operator^T (zero-padded rows past P)
    ic_ref : (1, 1)      1 / (N * bin * bin)   (BN normalizer; padding-safe)
    o_ref  : (N, R, S)   output slab for this bin (lane-dense, S on lanes)
    """
    n = x_ref.shape[0]
    r = w_ref.shape[0]

    wmat = w_ref[...]                     # (R, C)
    mp = mp_ref[...]                      # (S, Pmax)
    mu = mu_ref[...]                      # (Pmax, S)

    # Pool + 1x1-conv per batch element (static unrolled loop; N is tiny).
    # Padded pool columns are zero -> padded y columns are zero -> they do not
    # perturb the sums below; padded upsample rows are zero -> no contribution.
    ys = []
    sum_y = jnp.zeros((r, 1), jnp.float32)
    sum_y2 = jnp.zeros((r, 1), jnp.float32)
    for i in range(n):
        pooled = jnp.dot(x_ref[i], mp, preferred_element_type=jnp.float32)   # (C, Pmax)
        y = jnp.dot(wmat, pooled, preferred_element_type=jnp.float32)        # (R, Pmax)
        ys.append(y)
        sum_y = sum_y + jnp.sum(y, axis=1, keepdims=True)                    # (R, 1)
        sum_y2 = sum_y2 + jnp.sum(y * y, axis=1, keepdims=True)              # (R, 1)

    # BatchNorm (training mode, biased variance) folded into one FMA.
    inv_cnt = ic_ref[...]                                                    # (1, 1)
    mean = sum_y * inv_cnt                                                   # (R, 1)
    var = jnp.maximum(sum_y2 * inv_cnt - mean * mean, 0.0)                   # (R, 1)
    scale = g_ref[...] * jax.lax.rsqrt(var + 1e-5)                           # (R, 1)
    shift = bt_ref[...] - mean * scale                                       # (R, 1)

    # Normalize + ReLU + bilinear upsample (lane-dense (R, S) stores).
    for i in range(n):
        z = jnp.maximum(ys[i] * scale + shift, 0.0)                          # (R, Pmax)
        o_ref[i] = jnp.dot(z, mu, preferred_element_type=jnp.float32)        # (R, S)


# ------------------------------ operator glue ------------------------------ #
def _adaptive_pool_matrix_np(out_size: int, in_size: int) -> np.ndarray:
    """(out_size, in_size) averaging matrix matching nn.AdaptiveAvgPool (1D)."""
    m = np.zeros((out_size, in_size), np.float32)
    for i in range(out_size):
        s0 = (i * in_size) // out_size                    # floor(i*in/out)
        e0 = -((-(i + 1) * in_size) // out_size)          # ceil((i+1)*in/out)
        m[i, s0:e0] = 1.0 / float(e0 - s0)
    return m


def _upsample_matrix_np(out_size: int, in_size: int) -> np.ndarray:
    """(out_size, in_size) 1D bilinear interpolation matrix, align_corners=True."""
    m = np.zeros((out_size, in_size), np.float32)
    if in_size == 1:
        m[:, 0] = 1.0
        return m
    scale = (in_size - 1) / (out_size - 1)
    for i in range(out_size):
        src = i * scale
        i0 = min(int(np.floor(src)), in_size - 2)
        frac = src - i0
        m[i, i0] += 1.0 - frac
        m[i, i0 + 1] += frac
    return m


def build_ppm_operators(n: int, h: int, w: int, bins):
    """Precompute (outside jit) the stacked pool/upsample operators per bin."""
    s = h * w
    ps = [b * b for b in bins]
    pmax = max(ps)
    nbins = len(bins)
    pool_stack = np.zeros((nbins, s, pmax), np.float32)     # x(C,S) @ pool -> (C,P)
    up_stack = np.zeros((nbins, pmax, s), np.float32)       # z(R,P) @ up   -> (R,S)
    inv_counts = np.zeros((nbins, 1, 1), np.float32)
    for i, bin_ in enumerate(bins):
        p = bin_ * bin_
        pool2d = np.kron(_adaptive_pool_matrix_np(bin_, h),
                         _adaptive_pool_matrix_np(bin_, w))          # (P, S)
        up2d = np.kron(_upsample_matrix_np(h, bin_),
                       _upsample_matrix_np(w, bin_))                 # (S, P)
        pool_stack[i, :, :p] = pool2d.T
        up_stack[i, :p, :] = up2d.T
        inv_counts[i, 0, 0] = 1.0 / float(n * p)
    return jnp.asarray(pool_stack), jnp.asarray(up_stack), jnp.asarray(inv_counts)


# --------------------------------- wrapper ---------------------------------- #
def ppm_forward(x, w_stack, g_stack, b_stack, pool_stack, up_stack, inv_counts):
    """PPM forward.  x: (N, C, H, W) f32 -> (N, C + nbins*R, H, W) f32."""
    n, c, h, w = x.shape
    s = h * w
    nbins, r, _ = w_stack.shape
    pmax = pool_stack.shape[2]

    x3 = x.reshape(n, c, s)                 # NCHW -> (N, C, S): pure reshape

    feat = pl.pallas_call(
        _ppm_bins_kernel,
        out_shape=jax.ShapeDtypeStruct((n, nbins * r, s), jnp.float32),
        grid=(nbins,),
        in_specs=[
            pl.BlockSpec((n, c, s), lambda b: (0, 0, 0)),          # x (resident)
            pl.BlockSpec((None, s, pmax), lambda b: (b, 0, 0)),    # poolT per bin
            pl.BlockSpec((None, r, c), lambda b: (b, 0, 0)),       # conv W per bin
            pl.BlockSpec((None, r, 1), lambda b: (b, 0, 0)),       # gamma
            pl.BlockSpec((None, r, 1), lambda b: (b, 0, 0)),       # beta
            pl.BlockSpec((None, pmax, s), lambda b: (b, 0, 0)),    # upsampleT per bin
            pl.BlockSpec((None, 1, 1), lambda b: (b, 0, 0)),       # 1/(N*P)
        ],
        out_specs=pl.BlockSpec((n, r, s), lambda b: (0, b, 0)),
        compiler_params=pltpu.CompilerParams(
            dimension_semantics=("parallel",)),                    # bins shard on v7x TCs
    )(x3, pool_stack, w_stack, g_stack, b_stack, up_stack, inv_counts)

    return jnp.concatenate([x, feat.reshape(n, nbins * r, h, w)], axis=1)


# ----------------------------------- main ----------------------------------- #
if __name__ == "__main__":
    # Small shapes consistent with the module: N=2, in_dim=4, H=W=16, reduction_dim=8.
    N, C, H, W = 2, 4, 16, 16
    R = 8
    BINS = (1, 2, 3, 6)

    key = jax.random.PRNGKey(0)
    k_x, *k_params = jax.random.split(key, 1 + 3 * len(BINS))
    x = jax.random.normal(k_x, (N, C, H, W), dtype=jnp.float32)

    conv_ws, gammas, betas = [], [], []
    for i, _ in enumerate(BINS):
        kw, kg, kb = k_params[3 * i], k_params[3 * i + 1], k_params[3 * i + 2]
        # Conv2d(in_dim, reduction_dim, 1, bias=False) weight -> (R, C)
        conv_ws.append(jax.random.normal(kw, (R, C), dtype=jnp.float32) * (2.0 / C) ** 0.5)
        # BatchNorm2d affine params (nontrivial but deterministic).
        gammas.append(1.0 + 0.1 * jax.random.normal(kg, (R,), dtype=jnp.float32))
        betas.append(0.1 * jax.random.normal(kb, (R,), dtype=jnp.float32))

    w_stack = jnp.stack(conv_ws)                                  # (nbins, R, C)
    g_stack = jnp.stack(gammas).reshape(len(BINS), R, 1)          # (nbins, R, 1)
    b_stack = jnp.stack(betas).reshape(len(BINS), R, 1)           # (nbins, R, 1)

    # Spatial operators precomputed once, outside the jitted call path.
    pool_stack, up_stack, inv_counts = build_ppm_operators(N, H, W, BINS)

    fwd = jax.jit(ppm_forward)
    out = fwd(x, w_stack, g_stack, b_stack, pool_stack, up_stack, inv_counts)
    out = jax.block_until_ready(out)

    assert out.shape == (N, C + len(BINS) * R, H, W), out.shape
    assert bool(jnp.all(jnp.isfinite(out)))
    print("KERNEL_OK")
</pallas_src>

<mosaic_0001>
module attributes {stable_mosaic.version = 11 : i64} {
  func.func @_ppm_bins_kernel(%arg0: i32, %arg1: memref<2x4x256xf32, #tpu.memory_space<vmem>>, %arg2: memref<1x256x36xf32, #tpu.memory_space<vmem>>, %arg3: memref<1x8x4xf32, #tpu.memory_space<vmem>>, %arg4: memref<1x8x1xf32, #tpu.memory_space<vmem>>, %arg5: memref<1x8x1xf32, #tpu.memory_space<vmem>>, %arg6: memref<1x36x256xf32, #tpu.memory_space<vmem>>, %arg7: memref<1x1x1xf32, #tpu.memory_space<vmem>>, %arg8: memref<2x8x256xf32, #tpu.memory_space<vmem>>) attributes {dimension_semantics = [#tpu.dimension_semantics<parallel>], iteration_bounds = array<i64: 4>, scalar_prefetch = 0 : i64, scratch_operands = 0 : i64, tpu.core_type = #tpu.core_type<tc>, window_params = [{pipeline_mode = #tpu.pipeline_mode<synchronous>, transform_indices = @transform_0, window_bounds = array<i64: 2, 4, 256>}, {transform_indices = @transform_1, window_bounds = array<i64: 1, 256, 36>}, {transform_indices = @transform_2, window_bounds = array<i64: 1, 8, 4>}, {transform_indices = @transform_3, window_bounds = array<i64: 1, 8, 1>}, {transform_indices = @transform_4, window_bounds = array<i64: 1, 8, 1>}, {transform_indices = @transform_5, window_bounds = array<i64: 1, 36, 256>}, {transform_indices = @transform_6, window_bounds = array<i64: 1, 1, 1>}, {transform_indices = @transform_7, window_bounds = array<i64: 2, 8, 256>}]} {
    %c0 = arith.constant 0 : index
    %c0_0 = arith.constant 0 : index
    %c0_1 = arith.constant 0 : index
    %0 = vector.load %arg3[%c0, %c0_0, %c0_1] : memref<1x8x4xf32, #tpu.memory_space<vmem>>, vector<1x8x4xf32>
    %1 = vector.shape_cast %0 : vector<1x8x4xf32> to vector<8x4xf32>
    %c0_2 = arith.constant 0 : index
    %c0_3 = arith.constant 0 : index
    %c0_4 = arith.constant 0 : index
    %2 = vector.load %arg2[%c0_2, %c0_3, %c0_4] : memref<1x256x36xf32, #tpu.memory_space<vmem>>, vector<1x256x36xf32>
    %3 = vector.shape_cast %2 : vector<1x256x36xf32> to vector<256x36xf32>
    %c0_5 = arith.constant 0 : index
    %c0_6 = arith.constant 0 : index
    %c0_7 = arith.constant 0 : index
    %4 = vector.load %arg6[%c0_5, %c0_6, %c0_7] : memref<1x36x256xf32, #tpu.memory_space<vmem>>, vector<1x36x256xf32>
    %5 = vector.shape_cast %4 : vector<1x36x256xf32> to vector<36x256xf32>
    %cst = arith.constant 0.000000e+00 : f32
    %6 = vector.broadcast %cst : f32 to vector<8x1xf32>
    %cst_8 = arith.constant 0.000000e+00 : f32
    %7 = vector.broadcast %cst_8 : f32 to vector<8x1xf32>
    %c0_9 = arith.constant 0 : index
    %c0_10 = arith.constant 0 : index
    %c0_11 = arith.constant 0 : index
    %8 = vector.load %arg1[%c0_9, %c0_10, %c0_11] : memref<2x4x256xf32, #tpu.memory_space<vmem>>, vector<1x4x256xf32>
    %9 = vector.shape_cast %8 : vector<1x4x256xf32> to vector<4x256xf32>
    %cst_12 = arith.constant dense<0.000000e+00> : vector<4x36xf32>
    %10 = tpu.matmul %9, %3, %cst_12 {dimension_numbers = #tpu.dot_dimension_numbers<[1], [0], [0], [1], [0, 0, 1, 1], [], []>} : vector<4x256xf32>, vector<256x36xf32>, vector<4x36xf32> -> vector<4x36xf32>
    %cst_13 = arith.constant dense<0.000000e+00> : vector<8x36xf32>
    %11 = tpu.matmul %1, %10, %cst_13 {dimension_numbers = #tpu.dot_dimension_numbers<[1], [0], [0], [1], [0, 0, 1, 1], [], []>} : vector<8x4xf32>, vector<4x36xf32>, vector<8x36xf32> -> vector<8x36xf32>
    %cst_14 = arith.constant dense<0.000000e+00> : vector<8xf32>
    %12 = vector.multi_reduction <add>, %11, %cst_14 [1] : vector<8x36xf32> to vector<8xf32>
    %13 = vector.shape_cast %12 : vector<8xf32> to vector<8x1xf32>
    %14 = arith.addf %6, %13 : vector<8x1xf32>
    %15 = arith.mulf %11, %11 : vector<8x36xf32>
    %cst_15 = arith.constant dense<0.000000e+00> : vector<8xf32>
    %16 = vector.multi_reduction <add>, %15, %cst_15 [1] : vector<8x36xf32> to vector<8xf32>
    %17 = vector.shape_cast %16 : vector<8xf32> to vector<8x1xf32>
    %18 = arith.addf %7, %17 : vector<8x1xf32>
    %c1 = arith.constant 1 : index
    %c0_16 = arith.constant 0 : index
    %c0_17 = arith.constant 0 : index
    %19 = vector.load %arg1[%c1, %c0_16, %c0_17] : memref<2x4x256xf32, #tpu.memory_space<vmem>>, vector<1x4x256xf32>
    %20 = vector.shape_cast %19 : vector<1x4x256xf32> to vector<4x256xf32>
    %cst_18 = arith.constant dense<0.000000e+00> : vector<4x36xf32>
    %21 = tpu.matmul %20, %3, %cst_18 {dimension_numbers = #tpu.dot_dimension_numbers<[1], [0], [0], [1], [0, 0, 1, 1], [], []>} : vector<4x256xf32>, vector<256x36xf32>, vector<4x36xf32> -> vector<4x36xf32>
    %cst_19 = arith.constant dense<0.000000e+00> : vector<8x36xf32>
    %22 = tpu.matmul %1, %21, %cst_19 {dimension_numbers = #tpu.dot_dimension_numbers<[1], [0], [0], [1], [0, 0, 1, 1], [], []>} : vector<8x4xf32>, vector<4x36xf32>, vector<8x36xf32> -> vector<8x36xf32>
    %cst_20 = arith.constant dense<0.000000e+00> : vector<8xf32>
    %23 = vector.multi_reduction <add>, %22, %cst_20 [1] : vector<8x36xf32> to vector<8xf32>
    %24 = vector.shape_cast %23 : vector<8xf32> to vector<8x1xf32>
    %25 = arith.addf %14, %24 : vector<8x1xf32>
    %26 = arith.mulf %22, %22 : vector<8x36xf32>
    %cst_21 = arith.constant dense<0.000000e+00> : vector<8xf32>
    %27 = vector.multi_reduction <add>, %26, %cst_21 [1] : vector<8x36xf32> to vector<8xf32>
    %28 = vector.shape_cast %27 : vector<8xf32> to vector<8x1xf32>
    %29 = arith.addf %18, %28 : vector<8x1xf32>
    %c0_22 = arith.constant 0 : index
    %c0_23 = arith.constant 0 : index
    %c0_24 = arith.constant 0 : index
    %30 = vector.load %arg7[%c0_22, %c0_23, %c0_24] : memref<1x1x1xf32, #tpu.memory_space<vmem>>, vector<1x1x1xf32>
    %31 = vector.shape_cast %30 : vector<1x1x1xf32> to vector<1x1xf32>
    %32 = vector.broadcast %31 : vector<1x1xf32> to vector<8x1xf32>
    %33 = arith.mulf %25, %32 : vector<8x1xf32>
    %34 = vector.broadcast %31 : vector<1x1xf32> to vector<8x1xf32>
    %35 = arith.mulf %29, %34 : vector<8x1xf32>
    %36 = arith.mulf %33, %33 : vector<8x1xf32>
    %37 = arith.subf %35, %36 : vector<8x1xf32>
    %cst_25 = arith.constant 0.000000e+00 : f32
    %38 = vector.broadcast %cst_25 : f32 to vector<8x1xf32>
    %39 = arith.maximumf %37, %38 : vector<8x1xf32>
    %c0_26 = arith.constant 0 : index
    %c0_27 = arith.constant 0 : index
    %c0_28 = arith.constant 0 : index
    %40 = vector.load %arg4[%c0_26, %c0_27, %c0_28] : memref<1x8x1xf32, #tpu.memory_space<vmem>>, vector<1x8x1xf32>
    %41 = vector.shape_cast %40 : vector<1x8x1xf32> to vector<8x1xf32>
    %cst_29 = arith.constant 9.99999974E-6 : f32
    %42 = vector.broadcast %cst_29 : f32 to vector<8x1xf32>
    %43 = arith.addf %39, %42 : vector<8x1xf32>
    %44 = math.rsqrt %43 : vector<8x1xf32>
    %45 = arith.mulf %41, %44 : vector<8x1xf32>
    %c0_30 = arith.constant 0 : index
    %c0_31 = arith.constant 0 : index
    %c0_32 = arith.constant 0 : index
    %46 = vector.load %arg5[%c0_30, %c0_31, %c0_32] : memref<1x8x1xf32, #tpu.memory_space<vmem>>, vector<1x8x1xf32>
    %47 = vector.shape_cast %46 : vector<1x8x1xf32> to vector<8x1xf32>
    %48 = arith.mulf %33, %45 : vector<8x1xf32>
    %49 = arith.subf %47, %48 : vector<8x1xf32>
    %50 = vector.broadcast %45 : vector<8x1xf32> to vector<8x36xf32>
    %51 = arith.mulf %11, %50 : vector<8x36xf32>
    %52 = vector.broadcast %49 : vector<8x1xf32> to vector<8x36xf32>
    %53 = arith.addf %51, %52 : vector<8x36xf32>
    %cst_33 = arith.constant 0.000000e+00 : f32
    %54 = vector.broadcast %cst_33 : f32 to vector<8x36xf32>
    %55 = arith.maximumf %53, %54 : vector<8x36xf32>
    %cst_34 = arith.constant dense<0.000000e+00> : vector<8x256xf32>
    %56 = tpu.matmul %55, %5, %cst_34 {dimension_numbers = #tpu.dot_dimension_numbers<[1], [0], [0], [1], [0, 0, 1, 1], [], []>} : vector<8x36xf32>, vector<36x256xf32>, vector<8x256xf32> -> vector<8x256xf32>
    %c0_35 = arith.constant 0 : index
    %c0_36 = arith.constant 0 : index
    %c0_37 = arith.constant 0 : index
    %57 = vector.load %arg8[%c0_35, %c0_36, %c0_37] : memref<2x8x256xf32, #tpu.memory_space<vmem>>, vector<1x8x256xf32>
    %58 = vector.shape_cast %57 : vector<1x8x256xf32> to vector<8x256xf32>
    %59 = vector.shape_cast %56 : vector<8x256xf32> to vector<1x8x256xf32>
    tpu.vector_store %arg8[%c0_35, %c0_36, %c0_37], %59 {strides = array<i32>} : memref<2x8x256xf32, #tpu.memory_space<vmem>>, vector<1x8x256xf32>,
    %60 = vector.broadcast %45 : vector<8x1xf32> to vector<8x36xf32>
    %61 = arith.mulf %22, %60 : vector<8x36xf32>
    %62 = vector.broadcast %49 : vector<8x1xf32> to vector<8x36xf32>
    %63 = arith.addf %61, %62 : vector<8x36xf32>
    %cst_38 = arith.constant 0.000000e+00 : f32
    %64 = vector.broadcast %cst_38 : f32 to vector<8x36xf32>
    %65 = arith.maximumf %63, %64 : vector<8x36xf32>
    %cst_39 = arith.constant dense<0.000000e+00> : vector<8x256xf32>
    %66 = tpu.matmul %65, %5, %cst_39 {dimension_numbers = #tpu.dot_dimension_numbers<[1], [0], [0], [1], [0, 0, 1, 1], [], []>} : vector<8x36xf32>, vector<36x256xf32>, vector<8x256xf32> -> vector<8x256xf32>
    %c1_40 = arith.constant 1 : index
    %c0_41 = arith.constant 0 : index
    %c0_42 = arith.constant 0 : index
    %67 = vector.load %arg8[%c1_40, %c0_41, %c0_42] : memref<2x8x256xf32, #tpu.memory_space<vmem>>, vector<1x8x256xf32>
    %68 = vector.shape_cast %67 : vector<1x8x256xf32> to vector<8x256xf32>
    %69 = vector.shape_cast %66 : vector<8x256xf32> to vector<1x8x256xf32>
    tpu.vector_store %arg8[%c1_40, %c0_41, %c0_42], %69 {strides = array<i32>} : memref<2x8x256xf32, #tpu.memory_space<vmem>>, vector<1x8x256xf32>,
    return
  }
  func.func @transform_0(%arg0: i32) -> (i32, i32, i32) {
    %c0_i32 = arith.constant 0 : i32
    %c0_i32_0 = arith.constant 0 : i32
    %c0_i32_1 = arith.constant 0 : i32
    %c0_i32_2 = arith.constant 0 : i32
    return %c0_i32, %c0_i32_0, %c0_i32_1 : i32, i32, i32
  }
  func.func @transform_1(%arg0: i32) -> (i32, i32, i32) {
    %c0_i32 = arith.constant 0 : i32
    %c0_i32_0 = arith.constant 0 : i32
    %c0_i32_1 = arith.constant 0 : i32
    return %arg0, %c0_i32, %c0_i32_0 : i32, i32, i32
  }
  func.func @transform_2(%arg0: i32) -> (i32, i32, i32) {
    %c0_i32 = arith.constant 0 : i32
    %c0_i32_0 = arith.constant 0 : i32
    %c0_i32_1 = arith.constant 0 : i32
    return %arg0, %c0_i32, %c0_i32_0 : i32, i32, i32
  }
  func.func @transform_3(%arg0: i32) -> (i32, i32, i32) {
    %c0_i32 = arith.constant 0 : i32
    %c0_i32_0 = arith.constant 0 : i32
    %c0_i32_1 = arith.constant 0 : i32
    return %arg0, %c0_i32, %c0_i32_0 : i32, i32, i32
  }
  func.func @transform_4(%arg0: i32) -> (i32, i32, i32) {
    %c0_i32 = arith.constant 0 : i32
    %c0_i32_0 = arith.constant 0 : i32
    %c0_i32_1 = arith.constant 0 : i32
    return %arg0, %c0_i32, %c0_i32_0 : i32, i32, i32
  }
  func.func @transform_5(%arg0: i32) -> (i32, i32, i32) {
    %c0_i32 = arith.constant 0 : i32
    %c0_i32_0 = arith.constant 0 : i32
    %c0_i32_1 = arith.constant 0 : i32
    return %arg0, %c0_i32, %c0_i32_0 : i32, i32, i32
  }
  func.func @transform_6(%arg0: i32) -> (i32, i32, i32) {
    %c0_i32 = arith.constant 0 : i32
    %c0_i32_0 = arith.constant 0 : i32
    %c0_i32_1 = arith.constant 0 : i32
    return %arg0, %c0_i32, %c0_i32_0 : i32, i32, i32
  }
  func.func @transform_7(%arg0: i32) -> (i32, i32, i32) {
    %c0_i32 = arith.constant 0 : i32
    %c0_i32_0 = arith.constant 0 : i32
    %c0_i32_1 = arith.constant 0 : i32
    return %c0_i32, %arg0, %c0_i32_0 : i32, i32, i32
  }
}

</mosaic_0001>

<bundles_post_ra>
// kernel: ppm_forward.1
= control target key start
LH: loop header
LB: loop body
LE: loop exit
PB: predicated region body
PF: predicated region fallthrough
CT: control target
= control target key end

     0   :  { %s1272_s24 = smov 0   ;;  %s1274_s25 = smov 0   ;;  %s1530_s0 = inlined_call_operand.vmem [shape: f32[2,4,256], index: 0, kind: input, shape index: {}]   ;;  %s1531_s1 = inlined_call_operand.vmem [shape: f32[4,256,36], index: 1, kind: input, shape index: {}]   ;;  %s1532_s2 = inlined_call_operand.vmem [shape: f32[4,8,4], index: 2, kind: input, shape index: {}]   ;;  %s1533_s3 = inlined_call_operand.vmem [shape: f32[4,8,1], index: 3, kind: input, shape index: {}]   ;;  %s1534_s4 = inlined_call_operand.vmem [shape: f32[4,8,1], index: 4, kind: input, shape index: {}]   ;;  %s1535_s5 = inlined_call_operand.vmem [shape: f32[4,36,256], index: 5, kind: input, shape index: {}]   ;;  %s1536_s6 = inlined_call_operand.vmem [shape: f32[4,1,1], index: 6, kind: input, shape index: {}]   ;;  %s1537_s7 = inlined_call_operand.vmem [shape: f32[2,32,256], index: 7, kind: output, shape index: {}]  }
   0x1   :  { %s1276_s26 = smov 0  }
   0x2 LB: > { %s1285_s27 = sadd.s32 4294967295, %s1227_s26   ;;  %s1287_s28 = sadd.s32 1, %s1227_s26   ;;  %s1227_s26 = sphi %s1276_s26, %s1541_s26   ;;  %s1223_s25 = sphi %s1274_s25, %s1540_s25   ;;  %s1219_s24 = sphi %s1272_s24, %s1539_s24  }
   0x3   : > { %s198_s29 = ssub.s32 %s1227_s26, %s1287_s28  ;;  %s201_s30 = sadd.s32 1, %s1223_s25 }
   0x4   : > { %p199_p0 = scmp.eq.s32.totalorder %s198_s29, 0  ;;  %p211_p1 = scmp.ne.s32.totalorder %s1223_s25, %s1219_s24 }
   0x5   : > { %p212_p2 = scmp.eq.s32.totalorder %s1285_s27, 3  ;;  %p1058_p3 = scmp.ge.s32.totalorder %s1227_s26, 1 }
   0x6   : > { %s1295_s8 = scalar_select %p199_p0, %s1223_s25, %s201_s30  }
   0x7   : > { %p1297_p4 = por %p212_p2, %p211_p1  ;;  %p282_p5 = scmp.lt.s32.totalorder %s1227_s26, 5 }
   0x9   : > { %p283_p6 = pnand %p1058_p3, %p282_p5 }
   0xa   : > { %p333_p7 = scmp.lt.s32.totalorder (!%p283_p6), %s1285_s27, 3 }
   0xb   : > { %286 = sbr.rel (%p283_p6) target bundleno = 1177 (0x499), region = 48 }
  0x10   : > { %v1305_v0 = vld [vmem:[%s1530_s0] sm:$0xff]  ;;  %s1310_s12 = scalar_select %p333_p7, %s1285_s27, 3  ;;  %v1229_v34 = vmov 0.0   ;;  %vm1230_vm0 = vmmov 0   ;;  %v1068_v36 = vld [vmem:[%s1530_s0 + $0x8] sm:$0xff]  ;;  %vm479_vm1 = vcmask 1043456  }
  0x11   : > { %v403_v1 = vcombine.high %v1305_v0, %v1305_v0  ;;  %1161 = vmatprep.subr.mxu1 %v1229_v34  ;;  %1163 = vmatprep.mubr.msk.f32.mxu1 %vm1230_vm0, %v1229_v34  ;;  %vm475_vm2 = vcmask 31744   ;;  %v566_v40 = vcombine.high %v1068_v36, %v1068_v36  ;;  %vm553_vm3 = vcmask 293888   ;;  %s1086_s22 = sshll.u32 (%p1297_p4), %s1285_s27, 4 }
  0x12   : > { %s1085_s13 = sshll.u32 %s1310_s12, 8  ;;  %s1425_s17 = sshll.u32 %s1310_s12, 3  ;;  %v1231_v54 = vmov 0  }
  0x13   : > { %469 = vmatprep.mubr.f32.mxu0 %v403_v1  ;;  %s1316_s16 = scalar_lea.vmem %s1531_s1, %s1085_s13  ;;  %s341_s20 = scalar_lea.vmem %s1532_s2, %s1425_s17  ;;  %1199 = vset.pattern.permute.xlu0 %v1231_v54 }
  0x14   : > { %v1319_v2 = vld [vmem:[%s1316_s16 + $0xf8] sm:$0xff]  ;;  %v1325_v4 = vld [vmem:[%s1316_s16 + $0xf0] sm:$0xff]  ;;  %v1333_v6 = vld [vmem:[%s1316_s16 + $0xe8] sm:$0xff]  ;;  %1200 = vset.pattern.permute.xlu1 %v1231_v54  ;;  %s1171_s23 = smul.u32 80, %s1310_s12  ;;  %s357_s13 = scalar_lea.vmem %s1536_s6, %s1310_s12 }
  0x15   : > { %v1322_v3 = vld [vmem:[%s1316_s16 + $0x78] sm:$0xff]  ;;  %1087 = vmatprep.subr.mxu0 %v1319_v2  ;;  %v1329_v5 = vld [vmem:[%s1316_s16 + $0x70] sm:$0xff]  ;;  %v1337_v7 = vld [vmem:[%s1316_s16 + $0x68] sm:$0xff]  ;;  %s345_s15 = scalar_lea.vmem %s1533_s3, %s1425_s17  ;;  %s349_s19 = scalar_lea.vmem %s1534_s4, %s1425_s17 }
  0x16   : > { %1088 = vmatpush3.msra.mxu0 %v1322_v3  ;;  %v1341_v8 = vld [vmem:[%s1316_s16 + $0xe0] sm:$0xff]  ;;  %v1349_v10 = vld [vmem:[%s1316_s16 + $0xd8] sm:$0xff]  ;;  %v1357_v12 = vld [vmem:[%s1316_s16 + $0xd0] sm:$0xff]  ;;  %s1481_s30 = scalar_lea.vmem %s1535_s5, %s1171_s23  ;;  %s330_s17 = sand.u32 1, %s1219_s24  }
  0x17   : > { %1089 = vmatprep.subr.mxu0 %v1325_v4  ;;  %v1345_v9 = vld [vmem:[%s1316_s16 + $0x60] sm:$0xff]  ;;  %v1353_v11 = vld [vmem:[%s1316_s16 + $0x58] sm:$0xff]  ;;  %v1361_v13 = vld [vmem:[%s1316_s16 + $0x50] sm:$0xff]  ;;  %s923_s26 = scalar_lea.vmem (%p1297_p4), %s1537_s7, %s1086_s22 }
  0x18   : > { %1090 = vmatpush3.msra.mxu0 %v1329_v5  ;;  %v1365_v14 = vld [vmem:[%s1316_s16 + $0xc8] sm:$0xff]  ;;  %v1373_v16 = vld [vmem:[%s1316_s16 + $0xc0] sm:$0xff]  ;;  %v1381_v18 = vld [vmem:[%s1316_s16 + $0xb8] sm:$0xff] }
  0x19   : > { %1091 = vmatprep.subr.mxu0 %v1333_v6  ;;  %v1369_v15 = vld [vmem:[%s1316_s16 + $0x48] sm:$0xff]  ;;  %v1377_v17 = vld [vmem:[%s1316_s16 + $0x40] sm:$0xff]  ;;  %v1385_v19 = vld [vmem:[%s1316_s16 + $0x38] sm:$0xff] }
  0x1a   : > { %1092 = vmatpush3.msra.mxu0 %v1337_v7  ;;  %v1389_v20 = vld [vmem:[%s1316_s16 + $0xb0] sm:$0xff]  ;;  %v1397_v22 = vld [vmem:[%s1316_s16 + $0xa8] sm:$0xff]  ;;  %v1405_v24 = vld [vmem:[%s1316_s16 + $0xa0] sm:$0xff] }
  0x1b   : > { %1093 = vmatprep.subr.mxu0 %v1341_v8  ;;  %v1393_v21 = vld [vmem:[%s1316_s16 + $0x30] sm:$0xff]  ;;  %v1401_v23 = vld [vmem:[%s1316_s16 + $0x28] sm:$0xff]  ;;  %v363_v25 = vld [vmem:[%s1316_s16 + $0x20] sm:$0xff] }
  0x1c   : > { %1094 = vmatpush3.msra.mxu0 %v1345_v9  ;;  %v378_v26 = vld [vmem:[%s1316_s16 + $0x98] sm:$0xff]  ;;  %v377_v28 = vld [vmem:[%s1316_s16 + $0x90] sm:$0xff]  ;;  %v376_v30 = vld [vmem:[%s1316_s16 + $0x88] sm:$0xff] }
  0x1d   : > { %1095 = vmatprep.subr.mxu0 %v1349_v10  ;;  %v362_v27 = vld [vmem:[%s1316_s16 + $0x18] sm:$0xff]  ;;  %v361_v29 = vld [vmem:[%s1316_s16 + $0x10] sm:$0xff]  ;;  %v360_v31 = vld [vmem:[%s1316_s16 + $0x8] sm:$0xff] }
  0x1e   : > { %1096 = vmatpush3.msra.mxu0 %v1353_v11  ;;  %v375_v32 = vld [vmem:[%s1316_s16 + $0x80] sm:$0xff]  ;;  %v400_v55 = vld [vmem:[%s1481_s30 + $0x48] sm:$0xf] }
  0x1f   : > { %1097 = vmatprep.subr.mxu0 %v1357_v12  ;;  %v359_v33 = vld [vmem:[%s1316_s16] sm:$0xff] }
  0x20   : > { %1098 = vmatpush3.msra.mxu0 %v1361_v13  ;;  %v358_v39 = vld [vmem:[%s341_s20] sm:$0xff]  ;;  %s1059_s20 = sshll.u32 %s330_s17, 5 }
  0x21   : > { %1099 = vmatprep.subr.mxu0 %v1365_v14  ;;  %v399_v56 = vld [vmem:[%s1481_s30 + $0x40] sm:$0xf]  ;;  %s332_s21 = scalar_lea.vmem [#allocation2], %s1059_s20 }
  0x22   : > { %1100 = vmatpush3.msra.mxu0 %v1369_v15  ;;  %v1071_v59 = vld [vmem:[%s357_s13] ss:$0 sm:$0xff] }
  0x23   : > { %1101 = vmatprep.subr.mxu0 %v1373_v16 }
  0x24   : > { %1102 = vmatpush3.msra.mxu0 %v1377_v17 }
  0x25   : > { %1103 = vmatprep.subr.mxu0 %v1381_v18 }
  0x26   : > { %1104 = vmatpush3.msra.mxu0 %v1385_v19 }
  0x27   : > { %1105 = vmatprep.subr.mxu0 %v1389_v20 }
  0x28   : > { %1106 = vmatpush3.msra.mxu0 %v1393_v21 }
  0x29   : > { %1107 = vmatprep.subr.mxu0 %v1397_v22 }
  0x2a   : > { %1108 = vmatpush3.msra.mxu0 %v1401_v23 }
  0x2b   : > { %1109 = vmatprep.subr.mxu0 %v1405_v24 }
  0x2c   : > { %1110 = vmatpush3.msra.mxu0 %v363_v25 }
  0x2d   : > { %1111 = vmatprep.subr.mxu0 %v378_v26 }
  0x2e   : > { %1112 = vmatpush3.msra.mxu0 %v362_v27 }
  0x2f   : > { %1113 = vmatprep.subr.mxu0 %v377_v28 }
  0x30   : > { %1114 = vmatpush3.msra.mxu0 %v361_v29 }
  0x31   : > { %1115 = vmatprep.subr.mxu0 %v376_v30 }
  0x32   : > { %1116 = vmatpush3.msra.mxu0 %v360_v31 }
  0x33   : > { %1117 = vmatprep.subr.mxu0 %v375_v32 }
  0x34   : > { %1118 = vmatpush3.msra.mxu0 %v359_v33 }
  0x35   : > { %470 = vmatmul.mubr.f32.vlgmr.msra.gmra.mxu0 %v1305_v0  ;;  %1166 = vmatprep.subr.mxu0 %v1229_v34 }
  0x36   : > { %1168 = vmatprep.mubr.msk.f32.mxu0 %vm1230_vm0, %v1229_v34 }
  0xf5   : > { %v1119_v35 = vpop.f32.mrf.mxu0 }
  0xf7   : > { %v1120_v37 = vpop.f32.mrf.mxu0 }
  0xf8   : > { %v1121_v38 = vadd.f32 %v1120_v37, %v1119_v35 }
  0xfa   : > { %1162 = vmatpush3.msk.msra.mxu1 %vm479_vm1, %v1121_v38 }
  0xfb   : > { %1164 = vmatmul.mubr.msk.f32.vlgmr.msra.gmra.mxu1 %vm475_vm2, %v358_v39  ;;  %1124 = vmatprep.subr.mxu1 %v1319_v2 }
  0xfc   : > { %1125 = vmatpush3.msra.mxu1 %v1322_v3  ;;  %632 = vmatprep.mubr.f32.mxu1 %v566_v40 }
  0xfd   : > { %1126 = vmatprep.subr.mxu1 %v1325_v4 }
  0xfe   : > { %1127 = vmatpush3.msra.mxu1 %v1329_v5 }
  0xff   : > { %1128 = vmatprep.subr.mxu1 %v1333_v6  ;;  %v732_v6 = vld [vmem:[%s345_s15] sm:$0xff] }
 0x100   : > { %1129 = vmatpush3.msra.mxu1 %v1337_v7  ;;  %v398_v7 = vld [vmem:[%s1481_s30 + $0x38] sm:$0xff] }
 0x101   : > { %1130 = vmatprep.subr.mxu1 %v1341_v8  ;;  %v397_v8 = vld [vmem:[%s1481_s30 + $0x30] sm:$0xff] }
 0x102   : > { %1131 = vmatpush3.msra.mxu1 %v1345_v9  ;;  %v396_v9 = vld [vmem:[%s1481_s30 + $0x28] sm:$0xff] }
 0x103   : > { %1132 = vmatprep.subr.mxu1 %v1349_v10  ;;  %v395_v10 = vld [vmem:[%s1481_s30 + $0x20] sm:$0xff] }
 0x104   : > { %1133 = vmatpush3.msra.mxu1 %v1353_v11 }
 0x105   : > { %1134 = vmatprep.subr.mxu1 %v1357_v12 }
 0x106   : > { %1135 = vmatpush3.msra.mxu1 %v1361_v13  ;;  %v736_v13 = vld [vmem:[%s349_s19] sm:$0xff] }
 0x107   : > { %1136 = vmatprep.subr.mxu1 %v1365_v14  ;;  %v394_v14 = vld [vmem:[%s1481_s30 + $0x18] sm:$0xff] }
 0x108   : > { %1137 = vmatpush3.msra.mxu1 %v1369_v15 }
 0x109   : > { %1138 = vmatprep.subr.mxu1 %v1373_v16  ;;  %v393_v16 = vld [vmem:[%s1481_s30 + $0x10] sm:$0xff] }
 0x10a   : > { %1139 = vmatpush3.msra.mxu1 %v1377_v17  ;;  %v392_v17 = vld [vmem:[%s1481_s30 + $0x8] sm:$0xff] }
 0x10b   : > { %1140 = vmatprep.subr.mxu1 %v1381_v18 }
 0x10c   : > { %1141 = vmatpush3.msra.mxu1 %v1385_v19  ;;  %v391_v19 = vld [vmem:[%s1481_s30] sm:$0xff] }
 0x10d   : > { %1142 = vmatprep.subr.mxu1 %v1389_v20 }
 0x10e   : > { %1143 = vmatpush3.msra.mxu1 %v1393_v21 }
 0x10f   : > { %1144 = vmatprep.subr.mxu1 %v1397_v22 }
 0x110   : > { %1145 = vmatpush3.msra.mxu1 %v1401_v23 }
 0x111   : > { %1146 = vmatprep.subr.mxu1 %v1405_v24 }
 0x112   : > { %1147 = vmatpush3.msra.mxu1 %v363_v25 }
 0x113   : > { %1148 = vmatprep.subr.mxu1 %v378_v26 }
 0x114   : > { %1149 = vmatpush3.msra.mxu1 %v362_v27 }
 0x115   : > { %1150 = vmatprep.subr.mxu1 %v377_v28 }
 0x116   : > { %1151 = vmatpush3.msra.mxu1 %v361_v29 }
 0x117   : > { %1152 = vmatprep.subr.mxu1 %v376_v30 }
 0x118   : > { %1153 = vmatpush3.msra.mxu1 %v360_v31 }
 0x119   : > { %1154 = vmatprep.subr.mxu1 %v375_v32 }
 0x11a   : > { %1155 = vmatpush3.msra.mxu1 %v359_v33 }
 0x11b   : > { %633 = vmatmul.mubr.f32.vlgmr.msra.gmra.mxu1 %v1068_v36  ;;  %1072 = vmatprep.subr.msk.mxu1 %vm479_vm1, %v400_v55 }
 0x11c   : > { %825 = vmatprep.mubr.f32.mxu1 %v1229_v34  ;;  %1073 = vmatpush1.msk.msra.mxu1 %vm479_vm1, %v399_v56 }
 0x11d   : > { %785 = vmatprep.subr.mxu1 %v398_v7 }
 0x11e   : > { %786 = vmatpush1.msra.mxu1 %v397_v8 }
 0x11f   : > { %787 = vmatprep.subr.mxu1 %v396_v9 }
 0x120   : > { %788 = vmatpush1.msra.mxu1 %v395_v10 }
 0x121   : > { %789 = vmatprep.subr.mxu1 %v394_v14 }
 0x122   : > { %790 = vmatpush1.msra.mxu1 %v393_v16 }
 0x123   : > { %791 = vmatprep.subr.mxu1 %v392_v17 }
 0x124   : > { %792 = vmatpush1.msra.mxu1 %v391_v19 }
 0x1bb   : > { %v1460_v41 = vpop.f32.mrf.mxu1 }
 0x1bc   : > { %v554_v42 = vsel %vm553_vm3, %v1460_v41, 0.0  ;;  %v558_v43 = vmul.f32 %v1460_v41, %v1460_v41 }
 0x1bd   : > { %v1165_v44 = vpop.f32.mrf.mxu1  ;;  %555 = vadd.xlane.f32.xlu0 %v554_v42 }
 0x1be   : > { %v559_v45 = vsel %vm553_vm3, %v558_v43, 0.0 }
 0x1bf   : > { %560 = vadd.xlane.f32.xlu1 %v559_v45 }
 0x1db   : > { %v1156_v46 = vpop.f32.mrf.mxu1 }
 0x1dd   : > { %v1157_v47 = vpop.f32.mrf.mxu1 }
 0x1de   : > { %v1158_v48 = vadd.f32 %v1157_v47, %v1156_v46 }
 0x1e0   : > { %1167 = vmatpush3.msk.msra.mxu0 %vm479_vm1, %v1158_v48 }
 0x1e1   : > { %1169 = vmatmul.mubr.msk.f32.vlgmr.msra.gmra.mxu0 %vm475_vm2, %v358_v39  ;;  %1075 = vmatprep.subr.msk.mxu0 %vm479_vm1, %v400_v55 }
 0x1e2   : > { %904 = vmatprep.mubr.f32.mxu0 %v1229_v34  ;;  %1076 = vmatpush1.msk.msra.mxu0 %vm479_vm1, %v399_v56 }
 0x1e3   : > { %864 = vmatprep.subr.mxu0 %v398_v7 }
 0x1e4   : > { %865 = vmatpush1.msra.mxu0 %v397_v8 }
 0x1e5   : > { %866 = vmatprep.subr.mxu0 %v396_v9 }
 0x1e6   : > { %867 = vmatpush1.msra.mxu0 %v395_v10 }
 0x1e7   : > { %868 = vmatprep.subr.mxu0 %v394_v14 }
 0x1e8   : > { %869 = vmatpush1.msra.mxu0 %v393_v16 }
 0x1e9   : > { %870 = vmatprep.subr.mxu0 %v392_v17 }
 0x1ea   : > { %871 = vmatpush1.msra.mxu0 %v391_v19 }
 0x246   : > { %v556_v57 = vpop.xlane.xlu0 %555 }
 0x248   : > { %v561_v58 = vpop.xlane.xlu1 %560 }
 0x2a1   : > { %v1470_v49 = vpop.f32.mrf.mxu0 }
 0x2a2   : > { %v711_v50 = vsel %vm553_vm3, %v1470_v49, 0.0  ;;  %v715_v51 = vmul.f32 %v1470_v49, %v1470_v49 }
 0x2a3   : > { %712 = vadd.xlane.f32.xlu0 %v711_v50  ;;  %v1170_v52 = vpop.f32.mrf.mxu0 }
 0x2a4   : > { %v716_v53 = vsel %vm553_vm3, %v715_v51, 0.0 }
 0x2a5   : > { %717 = vadd.xlane.f32.xlu1 %v716_v53 }
 0x32c   : > { %v713_v60 = vpop.xlane.xlu0 %712 }
 0x32d   : > { %v714_v61 = vadd.f32 %v713_v60, %v556_v57 }
 0x32e   : > { %v718_v62 = vpop.xlane.xlu1 %717 }
 0x32f   : > { %v727_v63 = vmul.f32 %v1071_v59, %v714_v61  ;;  %v719_v0 = vadd.f32 %v718_v62, %v561_v58 }
 0x331   : > { %v729_v1 = vmul.f32 %v727_v63, %v727_v63  ;;  %v728_v2 = vmul.f32 %v1071_v59, %v719_v0 }
 0x333   : > { %v730_v3 = vsub.f32 %v728_v2, %v729_v1 }
 0x335   : > { %v731_v4 = vmax.f32 %v730_v3, 0.0 }
 0x337   : > { %v733_v5 = vadd.f32 1e-05, %v731_v4 }
 0x339   : > { %1203 = vrsqrt.f32 %v733_v5 }
 0x346   : > { %v1204_v11 = vpop.eup %1203 }
 0x347   : > { %v735_v12 = vmul.f32 %v1204_v11, %v732_v6 }
 0x349   : > { %741 = vperm.xlu0 %1199, %v735_v12   ;;  %v737_v15 = vmul.f32 %v735_v12, %v727_v63 }
 0x34b   : > { %v738_v18 = vsub.f32 %v736_v13, %v737_v15 }
 0x34d   : > { %747 = vperm.xlu1 %1200, %v738_v18  }
 0x3c4   : > { %v742_v20 = vpop.permute.xlu0 %741 }
 0x3c5   : > { %v744_v21 = vmul.f32 %v742_v20, %v1460_v41  ;;  %v834_v22 = vmul.f32 %v742_v20, %v1470_v49 }
 0x3c8   : > { %v748_v23 = vpop.permute.xlu1 %747 }
 0x3c9   : > { %v750_v24 = vadd.f32 %v748_v23, %v744_v21  ;;  %v835_v25 = vadd.f32 %v834_v22, %v748_v23 }
 0x3cb   : > { %v751_v26 = vmax.f32 %v750_v24, 0.0  ;;  %v836_v27 = vmax.f32 %v835_v25, 0.0 }
 0x3cd   : > { %1074 = vmatmul.mubr.msk.f32.vlgmr.msra.gmra.mxu1 %vm553_vm3, %v751_v26  ;;  %1077 = vmatmul.mubr.msk.f32.vlgmr.msra.gmra.mxu0 %vm553_vm3, %v836_v27 }
 0x48c   : > { %920 = sbr.rel (!%p1297_p4) target bundleno = 1177 (0x499), region = 52 }
 0x48d   : > { %v827_v28 = vpop.f32.mrf.mxu1  ;;  %v906_v29 = vpop.f32.mrf.mxu0 }
 0x48e   : > { %832 = vst [vmem:[%s332_s21] sm:$0xff] %v827_v28  ;;  %1078 = vst [vmem:[%s332_s21 + $0x10] sm:$0xff] %v906_v29 }
 0x48f   : > { %v829_v30 = vpop.f32.mrf.mxu1  ;;  %v908_v31 = vpop.f32.mrf.mxu0 }
 0x490   : > { %833 = vst [vmem:[%s332_s21 + $0x8] sm:$0xff] %v829_v30  ;;  %1079 = vst [vmem:[%s332_s21 + $0x18] sm:$0xff] %v908_v31 }
 0x495   : > { %v936_v32 = vld [vmem:[%s332_s21] sm:$0xff]  ;;  %v940_v34 = vld [vmem:[%s332_s21 + $0x10] sm:$0xff] }
 0x496   : > { %937 = vst [vmem:[%s923_s26] sm:$0xff] %v936_v32  ;;  %941 = vst [vmem:[%s923_s26 + $0x40] sm:$0xff] %v940_v34 }
 0x497   : > { %v938_v33 = vld [vmem:[%s332_s21 + $0x8] sm:$0xff]  ;;  %v942_v35 = vld [vmem:[%s332_s21 + $0x18] sm:$0xff] }
 0x498   : > { %939 = vst [vmem:[%s923_s26 + $0x8] sm:$0xff] %v938_v33  ;;  %943 = vst [vmem:[%s923_s26 + $0x48] sm:$0xff] %v942_v35 }
 0x499 PF: > { %p14_p8 = scmp.ge.s32.totalorder %s1287_s28, 6   ;;  %s1539_s24 = smov %s1223_s25 }
 0x49a   : > { %s1540_s25 = smov %s1295_s8  ;;  %s1541_s26 = smov %s1287_s28 }
 0x49b   :  { %16 = sbr.rel (!%p14_p8) target bundleno = 2 (0x2), region = 118 }

</bundles_post_ra>
